<compile_context>
chip_gen: v7x
topology: tpu7x:2x2x1
jax: 0.10.0
libtpu: 0.0.40
codegen_flags: <defaults>
</compile_context>

<pallas_src>
import jax
import jax.numpy as jnp
from jax import lax
from jax.experimental import pallas as pl
from jax.experimental.pallas import tpu as pltpu

EPS = 1e-5


def make_block_kernel(N, H, W, Cin, Cout):
    NHW = N * H * W

    def kernel(x_ref, m_ref, w1_ref, g1_ref, b1_ref, w2_ref, g2_ref, b2_ref, o_ref):
        masks = m_ref[...]                           # (9, NHW) f32 {0,1}
        ones_col = jnp.ones((NHW, 1), jnp.float32)   # MXU-side BN reduction vector

        def conv3x3(x_cf, w2d):
            # x_cf: (cin, NHW) lane-dense. w2d: (Cout, 9*cin).
            # Build the im2col stack (9*cin, NHW): 8 rolled+masked taps plus the
            # center tap, concatenated along the channel/sublane axis, then one
            # deep-contraction MXU dot (K = 9*cin) instead of 9 tiny dots.
            taps = []
            for kh in range(3):
                for kw in range(3):
                    dh, dw = kh - 1, kw - 1
                    if dh == 0 and dw == 0:
                        taps.append(x_cf)
                    else:
                        shift = (-(dh * W + dw)) % NHW
                        rolled = pltpu.roll(x_cf, shift=shift, axis=1)
                        taps.append(rolled * masks[kh * 3 + kw])
            stacked = jnp.concatenate(taps, axis=0)              # (9*cin, NHW)
            return jnp.dot(w2d, stacked, preferred_element_type=jnp.float32)

        def bn_relu(acc, g_ref, b_ref):
            # Single-pass batch-norm (training-mode batch stats, biased var).
            # The cross-lane reductions run on the MXU (dots vs. a ones vector)
            # so they do not compete with the rolls for the XLU.
            inv_n = jnp.float32(1.0 / NHW)
            s = jnp.dot(acc, ones_col, preferred_element_type=jnp.float32)        # (Cout,1)
            s2 = jnp.dot(acc * acc, ones_col, preferred_element_type=jnp.float32)  # (Cout,1)
            mean = s * inv_n
            var = jnp.maximum(s2 * inv_n - mean * mean, 0.0)    # clamp: avoid NaN rsqrt
            scale = g_ref[...] * lax.rsqrt(var + EPS)           # (Cout,1)
            shift = b_ref[...] - mean * scale                   # (Cout,1)
            return jnp.maximum(acc * scale + shift, 0.0)

        y1 = bn_relu(conv3x3(x_ref[...], w1_ref[...]), g1_ref, b1_ref)   # stage 1
        y2 = bn_relu(conv3x3(y1, w2_ref[...]), g2_ref, b2_ref)           # stage 2
        o_ref[...] = y2

    return kernel


def _border_masks(N, H, W):
    """Host-precomputed (9, N*H*W) f32 validity masks for 3x3 zero padding."""
    NHW = N * H * W
    pos = jnp.arange(NHW, dtype=jnp.int32)
    h_idx = (pos % (H * W)) // W
    w_idx = pos % W
    rows = []
    for kh in range(3):
        for kw in range(3):
            dh, dw = kh - 1, kw - 1
            hv = jnp.logical_and(h_idx + dh >= 0, h_idx + dh < H)
            wv = jnp.logical_and(w_idx + dw >= 0, w_idx + dw < W)
            rows.append(jnp.logical_and(hv, wv).astype(jnp.float32))
    return jnp.stack(rows, axis=0)


def basic_block_r0(x_nchw, params):
    """Forward pass of BasicBlock_r0.  Input/output are NCHW float32.

    Conv weights are PyTorch OIHW; BN params are per-channel vectors.
    """
    w1, g1, b1, w2, g2, b2 = params
    N, Cin, H, W = x_nchw.shape
    Cout = w1.shape[0]
    NHW = N * H * W

    # Interface conversion (tiny): channel-first, flattened-spatial layout so
    # the kernel's lane axis is NHW.  Weights OIHW -> (Cout, kh, kw, Cin)
    # -> (Cout, 9*Cin), matching the kernel's tap-stacking order (kh, kw, cin).
    x_cf = jnp.transpose(x_nchw.astype(jnp.float32), (1, 0, 2, 3)).reshape(Cin, NHW)
    w1_2d = jnp.transpose(w1.astype(jnp.float32), (0, 2, 3, 1)).reshape(Cout, 9 * Cin)
    w2_2d = jnp.transpose(w2.astype(jnp.float32), (0, 2, 3, 1)).reshape(Cout, 9 * Cout)
    g1_2 = g1.reshape(Cout, 1).astype(jnp.float32)
    b1_2 = b1.reshape(Cout, 1).astype(jnp.float32)
    g2_2 = g2.reshape(Cout, 1).astype(jnp.float32)
    b2_2 = b2.reshape(Cout, 1).astype(jnp.float32)
    masks = _border_masks(N, H, W)  # (9, NHW)

    def full(shape):
        return pl.BlockSpec(shape, lambda i: (0,) * len(shape))

    out_cf = pl.pallas_call(
        make_block_kernel(N, H, W, Cin, Cout),
        out_shape=jax.ShapeDtypeStruct((Cout, NHW), jnp.float32),
        grid=(1,),
        in_specs=[
            full((Cin, NHW)),          # x, channel-first flat
            full((9, NHW)),            # precomputed border masks
            full((Cout, 9 * Cin)),     # conv1 weights, im2col layout
            full((Cout, 1)),           # bn1 gamma
            full((Cout, 1)),           # bn1 beta
            full((Cout, 9 * Cout)),    # conv2 weights, im2col layout
            full((Cout, 1)),           # bn2 gamma
            full((Cout, 1)),           # bn2 beta
        ],
        out_specs=full((Cout, NHW)),
        compiler_params=pltpu.CompilerParams(dimension_semantics=("arbitrary",)),
    )(x_cf, masks, w1_2d, g1_2, b1_2, w2_2d, g2_2, b2_2)

    return jnp.transpose(out_cf.reshape(Cout, N, H, W), (1, 0, 2, 3))  # -> NCHW


def _reference(x_nchw, params):
    """Pure-JAX reference with identical semantics (for correctness check)."""
    w1, g1, b1, w2, g2, b2 = params
    x = x_nchw.astype(jnp.float32)

    def conv(x, w):
        return lax.conv_general_dilated(
            x, w.astype(jnp.float32), window_strides=(1, 1),
            padding=((1, 1), (1, 1)),
            dimension_numbers=("NCHW", "OIHW", "NCHW"),
        )

    def bn_relu(y, g, b):
        m = jnp.mean(y, axis=(0, 2, 3), keepdims=True)
        v = jnp.mean((y - m) ** 2, axis=(0, 2, 3), keepdims=True)
        y = (y - m) * lax.rsqrt(v + EPS) * g.reshape(1, -1, 1, 1) + b.reshape(1, -1, 1, 1)
        return jnp.maximum(y, 0.0)

    y = bn_relu(conv(x, w1), g1, b1)
    y = bn_relu(conv(y, w2), g2, b2)
    return y


if __name__ == "__main__":
    # Small deterministic setup consistent with the module:
    # in_channels=4, out_channels=8, batch=2, spatial=16x16, stride=1.
    N, Cin, Cout, H, W = 2, 4, 8, 16, 16
    key = jax.random.PRNGKey(0)
    k1, k2, kx = jax.random.split(key, 3)

    # Conv weights in PyTorch OIHW layout (bias=False in the module).
    w1 = 0.1 * jax.random.normal(k1, (Cout, Cin, 3, 3), jnp.float32)
    w2 = 0.1 * jax.random.normal(k2, (Cout, Cout, 3, 3), jnp.float32)
    # BatchNorm affine params, PyTorch default init: weight=1, bias=0.
    g1 = jnp.ones((Cout,), jnp.float32)
    b1 = jnp.zeros((Cout,), jnp.float32)
    g2 = jnp.ones((Cout,), jnp.float32)
    b2 = jnp.zeros((Cout,), jnp.float32)
    params = (w1, g1, b1, w2, g2, b2)

    x = jax.random.normal(kx, (N, Cin, H, W), jnp.float32)  # NCHW, like PyTorch

    out = jax.block_until_ready(basic_block_r0(x, params))
    ref = jax.block_until_ready(_reference(x, params))

    assert out.shape == (N, Cout, H, W)
    assert jnp.allclose(out, ref, atol=2e-3, rtol=2e-3), "mismatch vs pure-JAX reference"

    print("KERNEL_OK")
</pallas_src>

<mosaic_0001>
module attributes {stable_mosaic.version = 11 : i64} {
  func.func @kernel(%arg0: i32, %arg1: memref<4x512xf32, #tpu.memory_space<vmem>>, %arg2: memref<9x512xf32, #tpu.memory_space<vmem>>, %arg3: memref<8x36xf32, #tpu.memory_space<vmem>>, %arg4: memref<8x1xf32, #tpu.memory_space<vmem>>, %arg5: memref<8x1xf32, #tpu.memory_space<vmem>>, %arg6: memref<8x72xf32, #tpu.memory_space<vmem>>, %arg7: memref<8x1xf32, #tpu.memory_space<vmem>>, %arg8: memref<8x1xf32, #tpu.memory_space<vmem>>, %arg9: memref<8x512xf32, #tpu.memory_space<vmem>>) attributes {dimension_semantics = [#tpu.dimension_semantics<arbitrary>], iteration_bounds = array<i64: 1>, scalar_prefetch = 0 : i64, scratch_operands = 0 : i64, tpu.core_type = #tpu.core_type<tc>, window_params = [{pipeline_mode = #tpu.pipeline_mode<synchronous>, transform_indices = @transform_0, window_bounds = array<i64: 4, 512>}, {pipeline_mode = #tpu.pipeline_mode<synchronous>, transform_indices = @transform_1, window_bounds = array<i64: 9, 512>}, {pipeline_mode = #tpu.pipeline_mode<synchronous>, transform_indices = @transform_2, window_bounds = array<i64: 8, 36>}, {pipeline_mode = #tpu.pipeline_mode<synchronous>, transform_indices = @transform_3, window_bounds = array<i64: 8, 1>}, {pipeline_mode = #tpu.pipeline_mode<synchronous>, transform_indices = @transform_4, window_bounds = array<i64: 8, 1>}, {pipeline_mode = #tpu.pipeline_mode<synchronous>, transform_indices = @transform_5, window_bounds = array<i64: 8, 72>}, {pipeline_mode = #tpu.pipeline_mode<synchronous>, transform_indices = @transform_6, window_bounds = array<i64: 8, 1>}, {pipeline_mode = #tpu.pipeline_mode<synchronous>, transform_indices = @transform_7, window_bounds = array<i64: 8, 1>}, {pipeline_mode = #tpu.pipeline_mode<synchronous>, transform_indices = @transform_8, window_bounds = array<i64: 8, 512>}]} {
    %c0 = arith.constant 0 : index
    %c0_0 = arith.constant 0 : index
    %0 = vector.load %arg2[%c0, %c0_0] : memref<9x512xf32, #tpu.memory_space<vmem>>, vector<9x512xf32>
    %cst = arith.constant 1.000000e+00 : f32
    %1 = vector.broadcast %cst : f32 to vector<512x1xf32>
    %c0_1 = arith.constant 0 : index
    %c0_2 = arith.constant 0 : index
    %2 = vector.load %arg1[%c0_1, %c0_2] : memref<4x512xf32, #tpu.memory_space<vmem>>, vector<4x512xf32>
    %c0_3 = arith.constant 0 : index
    %c0_4 = arith.constant 0 : index
    %3 = vector.load %arg3[%c0_3, %c0_4] : memref<8x36xf32, #tpu.memory_space<vmem>>, vector<8x36xf32>
    %c17_i32 = arith.constant 17 : i32
    %4 = tpu.dynamic_rotate %2 by %c17_i32 dim 1 : vector<4x512xf32>, i32 -> vector<4x512xf32>
    %5 = vector.extract_strided_slice %0 {offsets = [0, 0], sizes = [1, 512], strides = [1, 1]} : vector<9x512xf32> to vector<1x512xf32>
    %6 = vector.shape_cast %5 : vector<1x512xf32> to vector<512xf32>
    %7 = vector.shape_cast %6 : vector<512xf32> to vector<1x512xf32>
    %8 = vector.broadcast %7 : vector<1x512xf32> to vector<4x512xf32>
    %9 = arith.mulf %4, %8 : vector<4x512xf32>
    %c16_i32 = arith.constant 16 : i32
    %10 = tpu.dynamic_rotate %2 by %c16_i32 dim 1 : vector<4x512xf32>, i32 -> vector<4x512xf32>
    %11 = vector.extract_strided_slice %0 {offsets = [1, 0], sizes = [1, 512], strides = [1, 1]} : vector<9x512xf32> to vector<1x512xf32>
    %12 = vector.shape_cast %11 : vector<1x512xf32> to vector<512xf32>
    %13 = vector.shape_cast %12 : vector<512xf32> to vector<1x512xf32>
    %14 = vector.broadcast %13 : vector<1x512xf32> to vector<4x512xf32>
    %15 = arith.mulf %10, %14 : vector<4x512xf32>
    %c15_i32 = arith.constant 15 : i32
    %16 = tpu.dynamic_rotate %2 by %c15_i32 dim 1 : vector<4x512xf32>, i32 -> vector<4x512xf32>
    %17 = vector.extract_strided_slice %0 {offsets = [2, 0], sizes = [1, 512], strides = [1, 1]} : vector<9x512xf32> to vector<1x512xf32>
    %18 = vector.shape_cast %17 : vector<1x512xf32> to vector<512xf32>
    %19 = vector.shape_cast %18 : vector<512xf32> to vector<1x512xf32>
    %20 = vector.broadcast %19 : vector<1x512xf32> to vector<4x512xf32>
    %21 = arith.mulf %16, %20 : vector<4x512xf32>
    %c1_i32 = arith.constant 1 : i32
    %22 = tpu.dynamic_rotate %2 by %c1_i32 dim 1 : vector<4x512xf32>, i32 -> vector<4x512xf32>
    %23 = vector.extract_strided_slice %0 {offsets = [3, 0], sizes = [1, 512], strides = [1, 1]} : vector<9x512xf32> to vector<1x512xf32>
    %24 = vector.shape_cast %23 : vector<1x512xf32> to vector<512xf32>
    %25 = vector.shape_cast %24 : vector<512xf32> to vector<1x512xf32>
    %26 = vector.broadcast %25 : vector<1x512xf32> to vector<4x512xf32>
    %27 = arith.mulf %22, %26 : vector<4x512xf32>
    %c511_i32 = arith.constant 511 : i32
    %28 = tpu.dynamic_rotate %2 by %c511_i32 dim 1 : vector<4x512xf32>, i32 -> vector<4x512xf32>
    %29 = vector.extract_strided_slice %0 {offsets = [5, 0], sizes = [1, 512], strides = [1, 1]} : vector<9x512xf32> to vector<1x512xf32>
    %30 = vector.shape_cast %29 : vector<1x512xf32> to vector<512xf32>
    %31 = vector.shape_cast %30 : vector<512xf32> to vector<1x512xf32>
    %32 = vector.broadcast %31 : vector<1x512xf32> to vector<4x512xf32>
    %33 = arith.mulf %28, %32 : vector<4x512xf32>
    %c497_i32 = arith.constant 497 : i32
    %34 = tpu.dynamic_rotate %2 by %c497_i32 dim 1 : vector<4x512xf32>, i32 -> vector<4x512xf32>
    %35 = vector.extract_strided_slice %0 {offsets = [6, 0], sizes = [1, 512], strides = [1, 1]} : vector<9x512xf32> to vector<1x512xf32>
    %36 = vector.shape_cast %35 : vector<1x512xf32> to vector<512xf32>
    %37 = vector.shape_cast %36 : vector<512xf32> to vector<1x512xf32>
    %38 = vector.broadcast %37 : vector<1x512xf32> to vector<4x512xf32>
    %39 = arith.mulf %34, %38 : vector<4x512xf32>
    %c496_i32 = arith.constant 496 : i32
    %40 = tpu.dynamic_rotate %2 by %c496_i32 dim 1 : vector<4x512xf32>, i32 -> vector<4x512xf32>
    %41 = vector.extract_strided_slice %0 {offsets = [7, 0], sizes = [1, 512], strides = [1, 1]} : vector<9x512xf32> to vector<1x512xf32>
    %42 = vector.shape_cast %41 : vector<1x512xf32> to vector<512xf32>
    %43 = vector.shape_cast %42 : vector<512xf32> to vector<1x512xf32>
    %44 = vector.broadcast %43 : vector<1x512xf32> to vector<4x512xf32>
    %45 = arith.mulf %40, %44 : vector<4x512xf32>
    %c495_i32 = arith.constant 495 : i32
    %46 = tpu.dynamic_rotate %2 by %c495_i32 dim 1 : vector<4x512xf32>, i32 -> vector<4x512xf32>
    %47 = vector.extract_strided_slice %0 {offsets = [8, 0], sizes = [1, 512], strides = [1, 1]} : vector<9x512xf32> to vector<1x512xf32>
    %48 = vector.shape_cast %47 : vector<1x512xf32> to vector<512xf32>
    %49 = vector.shape_cast %48 : vector<512xf32> to vector<1x512xf32>
    %50 = vector.broadcast %49 : vector<1x512xf32> to vector<4x512xf32>
    %51 = arith.mulf %46, %50 : vector<4x512xf32>
    %52 = tpu.concatenate %9, %15, %21, %27, %2, %33, %39, %45, %51 in 0 : vector<4x512xf32>, vector<4x512xf32>, vector<4x512xf32>, vector<4x512xf32>, vector<4x512xf32>, vector<4x512xf32>, vector<4x512xf32>, vector<4x512xf32>, vector<4x512xf32> -> vector<36x512xf32>
    %cst_5 = arith.constant dense<0.000000e+00> : vector<8x512xf32>
    %53 = tpu.matmul %3, %52, %cst_5 {dimension_numbers = #tpu.dot_dimension_numbers<[1], [0], [0], [1], [0, 0, 1, 1], [], []>} : vector<8x36xf32>, vector<36x512xf32>, vector<8x512xf32> -> vector<8x512xf32>
    %cst_6 = arith.constant dense<0.000000e+00> : vector<8x1xf32>
    %54 = tpu.matmul %53, %1, %cst_6 {dimension_numbers = #tpu.dot_dimension_numbers<[1], [0], [0], [1], [0, 0, 1, 1], [], []>} : vector<8x512xf32>, vector<512x1xf32>, vector<8x1xf32> -> vector<8x1xf32>
    %55 = arith.mulf %53, %53 : vector<8x512xf32>
    %cst_7 = arith.constant dense<0.000000e+00> : vector<8x1xf32>
    %56 = tpu.matmul %55, %1, %cst_7 {dimension_numbers = #tpu.dot_dimension_numbers<[1], [0], [0], [1], [0, 0, 1, 1], [], []>} : vector<8x512xf32>, vector<512x1xf32>, vector<8x1xf32> -> vector<8x1xf32>
    %cst_8 = arith.constant 0.001953125 : f32
    %57 = vector.broadcast %cst_8 : f32 to vector<8x1xf32>
    %58 = arith.mulf %54, %57 : vector<8x1xf32>
    %cst_9 = arith.constant 0.001953125 : f32
    %59 = vector.broadcast %cst_9 : f32 to vector<8x1xf32>
    %60 = arith.mulf %56, %59 : vector<8x1xf32>
    %61 = arith.mulf %58, %58 : vector<8x1xf32>
    %62 = arith.subf %60, %61 : vector<8x1xf32>
    %cst_10 = arith.constant 0.000000e+00 : f32
    %63 = vector.broadcast %cst_10 : f32 to vector<8x1xf32>
    %64 = arith.maximumf %62, %63 : vector<8x1xf32>
    %c0_11 = arith.constant 0 : index
    %c0_12 = arith.constant 0 : index
    %65 = vector.load %arg4[%c0_11, %c0_12] : memref<8x1xf32, #tpu.memory_space<vmem>>, vector<8x1xf32>
    %cst_13 = arith.constant 9.99999974E-6 : f32
    %66 = vector.broadcast %cst_13 : f32 to vector<8x1xf32>
    %67 = arith.addf %64, %66 : vector<8x1xf32>
    %68 = math.rsqrt %67 : vector<8x1xf32>
    %69 = arith.mulf %65, %68 : vector<8x1xf32>
    %c0_14 = arith.constant 0 : index
    %c0_15 = arith.constant 0 : index
    %70 = vector.load %arg5[%c0_14, %c0_15] : memref<8x1xf32, #tpu.memory_space<vmem>>, vector<8x1xf32>
    %71 = arith.mulf %58, %69 : vector<8x1xf32>
    %72 = arith.subf %70, %71 : vector<8x1xf32>
    %73 = vector.broadcast %69 : vector<8x1xf32> to vector<8x512xf32>
    %74 = arith.mulf %53, %73 : vector<8x512xf32>
    %75 = vector.broadcast %72 : vector<8x1xf32> to vector<8x512xf32>
    %76 = arith.addf %74, %75 : vector<8x512xf32>
    %cst_16 = arith.constant 0.000000e+00 : f32
    %77 = vector.broadcast %cst_16 : f32 to vector<8x512xf32>
    %78 = arith.maximumf %76, %77 : vector<8x512xf32>
    %c0_17 = arith.constant 0 : index
    %c0_18 = arith.constant 0 : index
    %79 = vector.load %arg6[%c0_17, %c0_18] : memref<8x72xf32, #tpu.memory_space<vmem>>, vector<8x72xf32>
    %c17_i32_19 = arith.constant 17 : i32
    %80 = tpu.dynamic_rotate %78 by %c17_i32_19 dim 1 : vector<8x512xf32>, i32 -> vector<8x512xf32>
    %81 = vector.extract_strided_slice %0 {offsets = [0, 0], sizes = [1, 512], strides = [1, 1]} : vector<9x512xf32> to vector<1x512xf32>
    %82 = vector.shape_cast %81 : vector<1x512xf32> to vector<512xf32>
    %83 = vector.shape_cast %82 : vector<512xf32> to vector<1x512xf32>
    %84 = vector.broadcast %83 : vector<1x512xf32> to vector<8x512xf32>
    %85 = arith.mulf %80, %84 : vector<8x512xf32>
    %c16_i32_20 = arith.constant 16 : i32
    %86 = tpu.dynamic_rotate %78 by %c16_i32_20 dim 1 : vector<8x512xf32>, i32 -> vector<8x512xf32>
    %87 = vector.extract_strided_slice %0 {offsets = [1, 0], sizes = [1, 512], strides = [1, 1]} : vector<9x512xf32> to vector<1x512xf32>
    %88 = vector.shape_cast %87 : vector<1x512xf32> to vector<512xf32>
    %89 = vector.shape_cast %88 : vector<512xf32> to vector<1x512xf32>
    %90 = vector.broadcast %89 : vector<1x512xf32> to vector<8x512xf32>
    %91 = arith.mulf %86, %90 : vector<8x512xf32>
    %c15_i32_21 = arith.constant 15 : i32
    %92 = tpu.dynamic_rotate %78 by %c15_i32_21 dim 1 : vector<8x512xf32>, i32 -> vector<8x512xf32>
    %93 = vector.extract_strided_slice %0 {offsets = [2, 0], sizes = [1, 512], strides = [1, 1]} : vector<9x512xf32> to vector<1x512xf32>
    %94 = vector.shape_cast %93 : vector<1x512xf32> to vector<512xf32>
    %95 = vector.shape_cast %94 : vector<512xf32> to vector<1x512xf32>
    %96 = vector.broadcast %95 : vector<1x512xf32> to vector<8x512xf32>
    %97 = arith.mulf %92, %96 : vector<8x512xf32>
    %c1_i32_22 = arith.constant 1 : i32
    %98 = tpu.dynamic_rotate %78 by %c1_i32_22 dim 1 : vector<8x512xf32>, i32 -> vector<8x512xf32>
    %99 = vector.extract_strided_slice %0 {offsets = [3, 0], sizes = [1, 512], strides = [1, 1]} : vector<9x512xf32> to vector<1x512xf32>
    %100 = vector.shape_cast %99 : vector<1x512xf32> to vector<512xf32>
    %101 = vector.shape_cast %100 : vector<512xf32> to vector<1x512xf32>
    %102 = vector.broadcast %101 : vector<1x512xf32> to vector<8x512xf32>
    %103 = arith.mulf %98, %102 : vector<8x512xf32>
    %c511_i32_23 = arith.constant 511 : i32
    %104 = tpu.dynamic_rotate %78 by %c511_i32_23 dim 1 : vector<8x512xf32>, i32 -> vector<8x512xf32>
    %105 = vector.extract_strided_slice %0 {offsets = [5, 0], sizes = [1, 512], strides = [1, 1]} : vector<9x512xf32> to vector<1x512xf32>
    %106 = vector.shape_cast %105 : vector<1x512xf32> to vector<512xf32>
    %107 = vector.shape_cast %106 : vector<512xf32> to vector<1x512xf32>
    %108 = vector.broadcast %107 : vector<1x512xf32> to vector<8x512xf32>
    %109 = arith.mulf %104, %108 : vector<8x512xf32>
    %c497_i32_24 = arith.constant 497 : i32
    %110 = tpu.dynamic_rotate %78 by %c497_i32_24 dim 1 : vector<8x512xf32>, i32 -> vector<8x512xf32>
    %111 = vector.extract_strided_slice %0 {offsets = [6, 0], sizes = [1, 512], strides = [1, 1]} : vector<9x512xf32> to vector<1x512xf32>
    %112 = vector.shape_cast %111 : vector<1x512xf32> to vector<512xf32>
    %113 = vector.shape_cast %112 : vector<512xf32> to vector<1x512xf32>
    %114 = vector.broadcast %113 : vector<1x512xf32> to vector<8x512xf32>
    %115 = arith.mulf %110, %114 : vector<8x512xf32>
    %c496_i32_25 = arith.constant 496 : i32
    %116 = tpu.dynamic_rotate %78 by %c496_i32_25 dim 1 : vector<8x512xf32>, i32 -> vector<8x512xf32>
    %117 = vector.extract_strided_slice %0 {offsets = [7, 0], sizes = [1, 512], strides = [1, 1]} : vector<9x512xf32> to vector<1x512xf32>
    %118 = vector.shape_cast %117 : vector<1x512xf32> to vector<512xf32>
    %119 = vector.shape_cast %118 : vector<512xf32> to vector<1x512xf32>
    %120 = vector.broadcast %119 : vector<1x512xf32> to vector<8x512xf32>
    %121 = arith.mulf %116, %120 : vector<8x512xf32>
    %c495_i32_26 = arith.constant 495 : i32
    %122 = tpu.dynamic_rotate %78 by %c495_i32_26 dim 1 : vector<8x512xf32>, i32 -> vector<8x512xf32>
    %123 = vector.extract_strided_slice %0 {offsets = [8, 0], sizes = [1, 512], strides = [1, 1]} : vector<9x512xf32> to vector<1x512xf32>
    %124 = vector.shape_cast %123 : vector<1x512xf32> to vector<512xf32>
    %125 = vector.shape_cast %124 : vector<512xf32> to vector<1x512xf32>
    %126 = vector.broadcast %125 : vector<1x512xf32> to vector<8x512xf32>
    %127 = arith.mulf %122, %126 : vector<8x512xf32>
    %128 = tpu.concatenate %85, %91, %97, %103, %78, %109, %115, %121, %127 in 0 : vector<8x512xf32>, vector<8x512xf32>, vector<8x512xf32>, vector<8x512xf32>, vector<8x512xf32>, vector<8x512xf32>, vector<8x512xf32>, vector<8x512xf32>, vector<8x512xf32> -> vector<72x512xf32>
    %cst_27 = arith.constant dense<0.000000e+00> : vector<8x512xf32>
    %129 = tpu.matmul %79, %128, %cst_27 {dimension_numbers = #tpu.dot_dimension_numbers<[1], [0], [0], [1], [0, 0, 1, 1], [], []>} : vector<8x72xf32>, vector<72x512xf32>, vector<8x512xf32> -> vector<8x512xf32>
    %cst_28 = arith.constant dense<0.000000e+00> : vector<8x1xf32>
    %130 = tpu.matmul %129, %1, %cst_28 {dimension_numbers = #tpu.dot_dimension_numbers<[1], [0], [0], [1], [0, 0, 1, 1], [], []>} : vector<8x512xf32>, vector<512x1xf32>, vector<8x1xf32> -> vector<8x1xf32>
    %131 = arith.mulf %129, %129 : vector<8x512xf32>
    %cst_29 = arith.constant dense<0.000000e+00> : vector<8x1xf32>
    %132 = tpu.matmul %131, %1, %cst_29 {dimension_numbers = #tpu.dot_dimension_numbers<[1], [0], [0], [1], [0, 0, 1, 1], [], []>} : vector<8x512xf32>, vector<512x1xf32>, vector<8x1xf32> -> vector<8x1xf32>
    %cst_30 = arith.constant 0.001953125 : f32
    %133 = vector.broadcast %cst_30 : f32 to vector<8x1xf32>
    %134 = arith.mulf %130, %133 : vector<8x1xf32>
    %cst_31 = arith.constant 0.001953125 : f32
    %135 = vector.broadcast %cst_31 : f32 to vector<8x1xf32>
    %136 = arith.mulf %132, %135 : vector<8x1xf32>
    %137 = arith.mulf %134, %134 : vector<8x1xf32>
    %138 = arith.subf %136, %137 : vector<8x1xf32>
    %cst_32 = arith.constant 0.000000e+00 : f32
    %139 = vector.broadcast %cst_32 : f32 to vector<8x1xf32>
    %140 = arith.maximumf %138, %139 : vector<8x1xf32>
    %c0_33 = arith.constant 0 : index
    %c0_34 = arith.constant 0 : index
    %141 = vector.load %arg7[%c0_33, %c0_34] : memref<8x1xf32, #tpu.memory_space<vmem>>, vector<8x1xf32>
    %cst_35 = arith.constant 9.99999974E-6 : f32
    %142 = vector.broadcast %cst_35 : f32 to vector<8x1xf32>
    %143 = arith.addf %140, %142 : vector<8x1xf32>
    %144 = math.rsqrt %143 : vector<8x1xf32>
    %145 = arith.mulf %141, %144 : vector<8x1xf32>
    %c0_36 = arith.constant 0 : index
    %c0_37 = arith.constant 0 : index
    %146 = vector.load %arg8[%c0_36, %c0_37] : memref<8x1xf32, #tpu.memory_space<vmem>>, vector<8x1xf32>
    %147 = arith.mulf %134, %145 : vector<8x1xf32>
    %148 = arith.subf %146, %147 : vector<8x1xf32>
    %149 = vector.broadcast %145 : vector<8x1xf32> to vector<8x512xf32>
    %150 = arith.mulf %129, %149 : vector<8x512xf32>
    %151 = vector.broadcast %148 : vector<8x1xf32> to vector<8x512xf32>
    %152 = arith.addf %150, %151 : vector<8x512xf32>
    %cst_38 = arith.constant 0.000000e+00 : f32
    %153 = vector.broadcast %cst_38 : f32 to vector<8x512xf32>
    %154 = arith.maximumf %152, %153 : vector<8x512xf32>
    %c0_39 = arith.constant 0 : index
    %c0_40 = arith.constant 0 : index
    %155 = vector.load %arg9[%c0_39, %c0_40] : memref<8x512xf32, #tpu.memory_space<vmem>>, vector<8x512xf32>
    tpu.vector_store %arg9[%c0_39, %c0_40], %154 {strides = array<i32>} : memref<8x512xf32, #tpu.memory_space<vmem>>, vector<8x512xf32>,
    return
  }
  func.func @transform_0(%arg0: i32) -> (i32, i32) {
    %c0_i32 = arith.constant 0 : i32
    %c0_i32_0 = arith.constant 0 : i32
    %c0_i32_1 = arith.constant 0 : i32
    return %c0_i32, %c0_i32_0 : i32, i32
  }
  func.func @transform_1(%arg0: i32) -> (i32, i32) {
    %c0_i32 = arith.constant 0 : i32
    %c0_i32_0 = arith.constant 0 : i32
    %c0_i32_1 = arith.constant 0 : i32
    return %c0_i32, %c0_i32_0 : i32, i32
  }
  func.func @transform_2(%arg0: i32) -> (i32, i32) {
    %c0_i32 = arith.constant 0 : i32
    %c0_i32_0 = arith.constant 0 : i32
    %c0_i32_1 = arith.constant 0 : i32
    return %c0_i32, %c0_i32_0 : i32, i32
  }
  func.func @transform_3(%arg0: i32) -> (i32, i32) {
    %c0_i32 = arith.constant 0 : i32
    %c0_i32_0 = arith.constant 0 : i32
    %c0_i32_1 = arith.constant 0 : i32
    return %c0_i32, %c0_i32_0 : i32, i32
  }
  func.func @transform_4(%arg0: i32) -> (i32, i32) {
    %c0_i32 = arith.constant 0 : i32
    %c0_i32_0 = arith.constant 0 : i32
    %c0_i32_1 = arith.constant 0 : i32
    return %c0_i32, %c0_i32_0 : i32, i32
  }
  func.func @transform_5(%arg0: i32) -> (i32, i32) {
    %c0_i32 = arith.constant 0 : i32
    %c0_i32_0 = arith.constant 0 : i32
    %c0_i32_1 = arith.constant 0 : i32
    return %c0_i32, %c0_i32_0 : i32, i32
  }
  func.func @transform_6(%arg0: i32) -> (i32, i32) {
    %c0_i32 = arith.constant 0 : i32
    %c0_i32_0 = arith.constant 0 : i32
    %c0_i32_1 = arith.constant 0 : i32
    return %c0_i32, %c0_i32_0 : i32, i32
  }
  func.func @transform_7(%arg0: i32) -> (i32, i32) {
    %c0_i32 = arith.constant 0 : i32
    %c0_i32_0 = arith.constant 0 : i32
    %c0_i32_1 = arith.constant 0 : i32
    return %c0_i32, %c0_i32_0 : i32, i32
  }
  func.func @transform_8(%arg0: i32) -> (i32, i32) {
    %c0_i32 = arith.constant 0 : i32
    %c0_i32_0 = arith.constant 0 : i32
    %c0_i32_1 = arith.constant 0 : i32
    return %c0_i32, %c0_i32_0 : i32, i32
  }
}

</mosaic_0001>

<bundles_post_ra>
// kernel: tpu_custom_call.1
= control target key start
LH: loop header
LB: loop body
LE: loop exit
PB: predicated region body
PF: predicated region fallthrough
CT: control target
= control target key end

     0   :  { %13 = vsyncpa [#allocation3], 0  ;;  %s2794_s0 = inlined_call_operand.vmem [shape: f32[4,512], index: 0, kind: input, shape index: {}]   ;;  %s2795_s1 = inlined_call_operand.hbm [shape: f32[9,512], index: 1, kind: input, shape index: {}]   ;;  %s2796_s2 = inlined_call_operand.vmem [shape: f32[8,36], index: 2, kind: input, shape index: {}]   ;;  %s2797_s3 = inlined_call_operand.vmem [shape: f32[8,1], index: 3, kind: input, shape index: {}]   ;;  %s2798_s4 = inlined_call_operand.vmem [shape: f32[8,1], index: 4, kind: input, shape index: {}]   ;;  %s2799_s5 = inlined_call_operand.vmem [shape: f32[8,72], index: 5, kind: input, shape index: {}]   ;;  %s2800_s6 = inlined_call_operand.vmem [shape: f32[8,1], index: 6, kind: input, shape index: {}]   ;;  %s2801_s7 = inlined_call_operand.vmem [shape: f32[8,1], index: 7, kind: input, shape index: {}]   ;;  %s2802_s8 = inlined_call_operand.hbm [shape: f32[8,512], index: 8, kind: output, shape index: {}]  }
   0x1   :  { %14 = vsyncpa [#allocation4], 0  ;;  %s2019_s27 = smov [#allocation2]   ;;  %s1971_s9 = scalar_lea.hbm %s2795_s1, 1024 }
   0x2   :  { %s22_s28 = sshll.u32 %s2019_s27, 4  ;;  %p1972_p0 = scmp.ne.s32.totalorder %s2795_s1, %s1971_s9  ;;  %s23_s28 = int_to_ptr.vmem [resolvable:$true] %s22_s28 }
   0x3   :  { %p1975_p1 = scmp.lt.u32.totalorder %s1971_s9, %s2795_s1 }
   0x5   :  { %p1977_p2 = pnand %p1975_p1, %p1972_p0 }
   0x7   :  { %1980 = shalt.err (!%p1977_p2)
}
   0x8   :  { %s1981_s14 = scalar_lea.vmem %s23_s28, 1024  ;;  %p1986_p4 = scmp.lt.s32.totalorder %s23_s28, %s23_s28 }
   0x9   :  { %p1982_p3 = scmp.ne.s32.totalorder %s23_s28, %s1981_s14  ;;  %p1987_p5 = scmp.lt.s32.totalorder %s1981_s14, %s1981_s14 }
   0xb   :  { %p1988_p6 = por %p1987_p5, %p1986_p4 }
   0xd   :  { %p1989_p7 = pnand %p1988_p6, %p1982_p3 }
   0xf   :  { %1992 = shalt.err (!%p1989_p7)
}
  0x10   :  { %s2020_s15 = smov 512   ;;  %s2021_s16 = smov 32  }
  0x11   :  { %28 = dma.hbm_to_vmem [thread:$0]  %s2795_s1, 1024, %s23_s28, [#allocation3], %s2020_s15, %s2020_s15, %s2021_s16  }
  0x12   :  { %2015 = dma.done.wait [#allocation3], 1024  }
  0x13   :  { %2016 = vsyncadd [#allocation3], 4294966272  ;;  %v2094_v0 = vld [vmem:[%s2794_s0 + $0x8] sm:$0xff]  ;;  %v2099_v1 = vld [vmem:[%s2794_s0] sm:$0xff]  ;;  %s2022_s23 = smov 16   ;;  %s2023_s1 = smov 1   ;;  %v69_v7 = vlaneseq }
  0x14   :  { %100 = vrot.lane.b32.xlu1 %v2094_v0, %s2022_s23  ;;  %96 = vrot.lane.b32.xlu0 %v2099_v1, %s2022_s23  ;;  %v2107_v2 = vcombine.high %v2094_v0, %v2094_v0  ;;  %v2115_v3 = vcombine.high %v2099_v1, %v2099_v1  ;;  %s2024_s0 = smov 17   ;;  %s2025_s24 = smov 15   ;;  %v2029_v4 = vmov 0.0   ;;  %v2181_v16 = vld [vmem:[#allocation2] sm:$0xff]  ;;  %v2183_v17 = vld [vmem:[#allocation2 + $0x18] sm:$0xff]  ;;  %v2185_v18 = vld [vmem:[#allocation2 + $0x8] sm:$0xff] }
  0x15   :  { %s2026_s25 = smov 127   ;;  %s2027_s26 = smov 112   ;;  %472 = vmatprep.mubr.f32.mxu0 %v2029_v4  ;;  %543 = vmatprep.mubr.f32.mxu1 %v2029_v4  ;;  %v2175_v10 = vshrl.u32 %v69_v7, 7  ;;  %v2177_v13 = vand.u32 127, %v69_v7  ;;  %v2187_v21 = vld [vmem:[#allocation2 + $0x10] sm:$0xff]  ;;  %vm375_vm3 = vcmask 1043456  }
  0x16   :  { %s2028_s27 = smov 113   ;;  %s2030_s28 = smov 111   ;;  %vm392_vm9 = vcmask 293888   ;;  %vm997_vm10 = vcmask 588800  }
  0x17   :  { %v111_v14 = vsub.s32 1, %v2175_v10  ;;  %v177_v15 = vsub.s32 3, %v2175_v10  ;;  %v78_v22 = vsub.s32 0, %v2175_v10  ;;  %vm104_vm0 = vcmp.lt.s32.totalorder %v2177_v13, 16 }
  0x18   :  { %102 = vrot.lane.b32.xlu1 %v2107_v2, %s2022_s23  ;;  %162 = vrot.lane.b32.xlu0 %v2099_v1, %s2023_s1  ;;  %vm170_vm1 = vcmp.lt.s32.totalorder %v2177_v13, 1  ;;  %v144_v31 = vsub.s32 2, %v2175_v10  ;;  %vm71_vm2 = vcmp.lt.s32.totalorder %v2177_v13, 17  ;;  %vm137_vm4 = vcmp.lt.s32.totalorder %v2177_v13, 15 }
  0x19   :  { %v2192_v23 = vrot.slane %v2181_v16, %v111_v14  ;;  %v2195_v24 = vrot.slane %v2183_v17, %v111_v14  ;;  %v2199_v25 = vrot.slane %v2185_v18, %v177_v15  ;;  %v2202_v26 = vrot.slane %v2185_v18, %v111_v14 }
  0x1a   :  { %v2205_v27 = vrot.slane %v2187_v21, %v111_v14  ;;  %v2208_v28 = vrot.slane %v2181_v16, %v177_v15  ;;  %v2212_v32 = vrot.slane %v2187_v21, %v177_v15  ;;  %v2215_v33 = vrot.slane %v2183_v17, %v177_v15 }
  0x1b   :  { %v2219_v34 = vrot.slane %v2185_v18, %v78_v22  ;;  %v2226_v37 = vrot.slane %v2181_v16, %v78_v22  ;;  %v2233_v40 = vrot.slane %v2187_v21, %v78_v22  ;;  %v2236_v41 = vrot.slane %v2183_v17, %v78_v22 }
  0x1c   :  { %164 = vrot.lane.b32.xlu1 %v2115_v3, %s2023_s1  ;;  %98 = vrot.lane.b32.xlu0 %v2115_v3, %s2022_s23  ;;  %v2244_v46 = vrot.slane %v2185_v18, %v144_v31  ;;  %v2255_v53 = vrot.slane %v2181_v16, %v144_v31  ;;  %v2258_v54 = vrot.slane %v2187_v21, %v144_v31  ;;  %vm203_vm5 = vcmp.lt.s32.totalorder %v2177_v13, 127 }
  0x1d   :  { %v2265_v58 = vrot.slane %v2183_v17, %v144_v31  ;;  %vm269_vm6 = vcmp.lt.s32.totalorder %v2177_v13, 112  ;;  %vm236_vm7 = vcmp.lt.s32.totalorder %v2177_v13, 113  ;;  %vm302_vm8 = vcmp.lt.s32.totalorder %v2177_v13, 111 }
  0x20   :  { %168 = vrot.lane.b32.xlu1 %v2107_v2, %s2023_s1  ;;  %166 = vrot.lane.b32.xlu0 %v2094_v0, %s2023_s1 }
  0x24   :  { %63 = vrot.lane.b32.xlu1 %v2115_v3, %s2024_s0  ;;  %61 = vrot.lane.b32.xlu0 %v2099_v1, %s2024_s0 }
  0x28   :  { %67 = vrot.lane.b32.xlu1 %v2107_v2, %s2024_s0  ;;  %65 = vrot.lane.b32.xlu0 %v2094_v0, %s2024_s0 }
  0x2c   :  { %131 = vrot.lane.b32.xlu1 %v2115_v3, %s2025_s24  ;;  %129 = vrot.lane.b32.xlu0 %v2099_v1, %s2025_s24 }
  0x30   :  { %135 = vrot.lane.b32.xlu1 %v2107_v2, %s2025_s24  ;;  %133 = vrot.lane.b32.xlu0 %v2094_v0, %s2025_s24 }
  0x34   :  { %197 = vrot.lane.b32.xlu1 %v2115_v3, %s2026_s25  ;;  %195 = vrot.lane.b32.xlu0 %v2099_v1, %s2026_s25 }
  0x38   :  { %201 = vrot.lane.b32.xlu1 %v2107_v2, %s2026_s25  ;;  %199 = vrot.lane.b32.xlu0 %v2094_v0, %s2026_s25 }
  0x3c   :  { %263 = vrot.lane.b32.xlu1 %v2115_v3, %s2027_s26  ;;  %261 = vrot.lane.b32.xlu0 %v2099_v1, %s2027_s26 }
  0x40   :  { %267 = vrot.lane.b32.xlu1 %v2107_v2, %s2027_s26  ;;  %265 = vrot.lane.b32.xlu0 %v2094_v0, %s2027_s26 }
  0x44   :  { %230 = vrot.lane.b32.xlu1 %v2115_v3, %s2028_s27  ;;  %228 = vrot.lane.b32.xlu0 %v2099_v1, %s2028_s27 }
  0x48   :  { %234 = vrot.lane.b32.xlu1 %v2107_v2, %s2028_s27  ;;  %232 = vrot.lane.b32.xlu0 %v2094_v0, %s2028_s27 }
  0x4c   :  { %296 = vrot.lane.b32.xlu1 %v2115_v3, %s2030_s28  ;;  %294 = vrot.lane.b32.xlu0 %v2099_v1, %s2030_s28 }
  0x50   :  { %300 = vrot.lane.b32.xlu1 %v2107_v2, %s2030_s28  ;;  %298 = vrot.lane.b32.xlu0 %v2094_v0, %s2030_s28 }
  0x86   :  { %v101_v5 = vpop.permute.xlu1 %100  ;;  %v97_v6 = vpop.permute.xlu0 %96 }
  0x8a   :  { %v103_v8 = vpop.permute.xlu1 %102  ;;  %v163_v9 = vpop.permute.xlu0 %162 }
  0x8b   :  { %v105_v35 = vsel %vm104_vm0, %v101_v5, %v103_v8  ;;  %v108_v36 = vsel %vm104_vm0, %v103_v8, %v97_v6 }
  0x8c   :  { %v125_v47 = vmul.f32 %v2192_v23, %v108_v36  ;;  %v128_v48 = vmul.f32 %v2195_v24, %v105_v35 }
  0x8e   :  { %v165_v11 = vpop.permute.xlu1 %164  ;;  %v99_v12 = vpop.permute.xlu0 %98  ;;  %v334_v7 = vrot.slane %v128_v48, 4 }
  0x8f   :  { %v173_v38 = vsel %vm170_vm1, %v163_v9, %v165_v11  ;;  %v107_v39 = vsel %vm104_vm0, %v97_v6, %v99_v12  ;;  %v106_v42 = vsel %vm104_vm0, %v99_v12, %v101_v5  ;;  %v331_v6 = vrot.slane %v125_v47, 4 }
  0x90   :  { %v192_v51 = vmul.f32 %v2199_v25, %v173_v38  ;;  %v126_v52 = vmul.f32 %v2202_v26, %v107_v39  ;;  %v127_v55 = vmul.f32 %v2205_v27, %v106_v42 }
  0x92   :  { %v169_v19 = vpop.permute.xlu1 %168  ;;  %v167_v20 = vpop.permute.xlu0 %166  ;;  %v332_v12 = vrot.slane %v126_v52, 4 }
  0x93   :  { %v174_v43 = vsel %vm170_vm1, %v169_v19, %v163_v9  ;;  %v172_v49 = vsel %vm170_vm1, %v165_v11, %v167_v20  ;;  %v171_v57 = vsel %vm170_vm1, %v167_v20, %v169_v19  ;;  %v344_v11 = vrot.slane %v192_v51, 4 }
  0x94   :  { %v191_v56 = vmul.f32 %v2208_v28, %v174_v43  ;;  %v193_v59 = vmul.f32 %v2212_v32, %v172_v49  ;;  %v194_v14 = vmul.f32 %v2215_v33, %v171_v57  ;;  %v333_v19 = vrot.slane %v127_v55, 4 }
  0x96   :  { %v64_v29 = vpop.permute.xlu1 %63  ;;  %v62_v30 = vpop.permute.xlu0 %61  ;;  %v343_v20 = vrot.slane %v191_v56, 4  ;;  %v345_v31 = vrot.slane %v193_v59, 4  ;;  %v346_v47 = vrot.slane %v194_v14, 4 }
  0x97   :  { %v74_v50 = vsel %vm71_vm2, %v62_v30, %v64_v29 }
  0x98   :  { %v93_v60 = vmul.f32 %v2219_v34, %v74_v50 }
  0x9a   :  { %v68_v44 = vpop.permute.xlu1 %67  ;;  %v66_v45 = vpop.permute.xlu0 %65  ;;  %v377_v38 = vsel %vm375_vm3, %v93_v60, %v332_v12 }
  0x9b   :  { %v75_v61 = vsel %vm71_vm2, %v68_v44, %v62_v30  ;;  %v72_v62 = vsel %vm71_vm2, %v66_v45, %v68_v44  ;;  %v73_v8 = vsel %vm71_vm2, %v64_v29, %v66_v45 }
  0x9c   :  { %v92_v22 = vmul.f32 %v2226_v37, %v75_v61  ;;  %v95_v30 = vmul.f32 %v2236_v41, %v72_v62  ;;  %v94_v35 = vmul.f32 %v2233_v40, %v73_v8 }
  0x9e   :  { %v132_v63 = vpop.permute.xlu1 %131  ;;  %v130_v5 = vpop.permute.xlu0 %129  ;;  %v376_v51 = vsel %vm375_vm3, %v92_v22, %v331_v6  ;;  %v379_v52 = vsel %vm375_vm3, %v95_v30, %v334_v7  ;;  %v378_v60 = vsel %vm375_vm3, %v94_v35, %v333_v19  ;;  %v210_v6 = vsub.s32 5, %v2175_v10 }
  0x9f   :  { %v140_v9 = vsel %vm137_vm4, %v130_v5, %v132_v63  ;;  %v276_v7 = vsub.s32 7, %v2175_v10  ;;  %v243_v30 = vsub.s32 6, %v2175_v10 }
  0xa0   :  { %v159_v15 = vmul.f32 %v2244_v46, %v140_v9  ;;  %v2303_v14 = vrot.slane %v2181_v16, %v210_v6  ;;  %v2310_v19 = vrot.slane %v2185_v18, %v210_v6 }
  0xa1   :  { %v2316_v22 = vrot.slane %v2181_v16, %v276_v7 }
  0xa2   :  { %v136_v36 = vpop.permute.xlu1 %135  ;;  %v134_v29 = vpop.permute.xlu0 %133  ;;  %v381_v39 = vsel %vm375_vm3, %v159_v15, %v344_v11  ;;  %v2306_v15 = vrot.slane %v2183_v17, %v210_v6 }
  0xa3   :  { %v141_v42 = vsel %vm137_vm4, %v136_v36, %v130_v5  ;;  %v138_v43 = vsel %vm137_vm4, %v134_v29, %v136_v36  ;;  %v139_v44 = vsel %vm137_vm4, %v132_v63, %v134_v29  ;;  %v1772_v45 = vpack.c.bf16 %v381_v39, %v377_v38 }
  0xa4   :  { %v158_v48 = vmul.f32 %v2255_v53, %v141_v42  ;;  %v160_v49 = vmul.f32 %v2258_v54, %v139_v44  ;;  %v161_v50 = vmul.f32 %v2265_v58, %v138_v43  ;;  %v2324_v29 = vrot.slane %v2183_v17, %v276_v7 }
  0xa5   :  { %1773 = vmatprep.subr.bf16.mxu0 %v1772_v45  ;;  %v2327_v39 = vrot.slane %v2185_v18, %v276_v7 }
  0xa6   :  { %v198_v55 = vpop.permute.xlu1 %197  ;;  %v196_v56 = vpop.permute.xlu0 %195  ;;  %v380_v57 = vsel %vm375_vm3, %v158_v48, %v343_v20  ;;  %v383_v59 = vsel %vm375_vm3, %v161_v50, %v346_v47  ;;  %v382_v61 = vsel %vm375_vm3, %v160_v49, %v345_v31  ;;  %v2313_v20 = vrot.slane %v2187_v21, %v210_v6 }
  0xa7   :  { %v1774_v62 = vpack.c.bf16 %v380_v57, %v376_v51  ;;  %v1780_v63 = vpack.c.bf16 %v383_v59, %v379_v52  ;;  %v1782_v5 = vpack.c.bf16 %v382_v61, %v378_v60  ;;  %v206_v42 = vsel %vm203_vm5, %v196_v56, %v198_v55 }
  0xa8   :  { %v2340_v47 = vrot.slane %v2187_v21, %v276_v7  ;;  %v2348_v51 = vrot.slane %v2181_v16, %v243_v30  ;;  %v224_v52 = vmul.f32 %v2303_v14, %v206_v42  ;;  %v2359_v16 = vrot.slane %v2183_v17, %v243_v30 }
  0xa9   :  { %1775 = vmatpush1.bf16.msra.mxu0 %v1774_v62  ;;  %1781 = vmatprep.subr.bf16.mxu1 %v1780_v63 }
  0xaa   :  { %v202_v8 = vpop.permute.xlu1 %201  ;;  %v200_v9 = vpop.permute.xlu0 %199  ;;  %1783 = vmatpush1.bf16.msra.mxu1 %v1782_v5  ;;  %v2362_v5 = vrot.slane %v2185_v18, %v243_v30 }
  0xab   :  { %v207_v31 = vsel %vm203_vm5, %v202_v8, %v196_v56  ;;  %v205_v35 = vsel %vm203_vm5, %v198_v55, %v200_v9  ;;  %v204_v10 = vsel %vm203_vm5, %v200_v9, %v202_v8  ;;  %v2365_v8 = vrot.slane %v2187_v21, %v243_v30 }
  0xac   :  { %v227_v48 = vmul.f32 %v2306_v15, %v207_v31  ;;  %v225_v49 = vmul.f32 %v2310_v19, %v205_v35  ;;  %v226_v55 = vmul.f32 %v2313_v20, %v204_v10 }
  0xae   :  { %v264_v11 = vpop.permute.xlu1 %263  ;;  %v262_v12 = vpop.permute.xlu0 %261  ;;  %v358_v9 = vrot.slane %v227_v48, 4  ;;  %v356_v6 = vrot.slane %v225_v49, 4 }
  0xaf   :  { %v272_v43 = vsel %vm269_vm6, %v262_v12, %v264_v11 }
  0xb0   :  { %v290_v56 = vmul.f32 %v2316_v22, %v272_v43  ;;  %v387_v48 = vsel %vm375_vm3, %v2107_v2, %v358_v9  ;;  %v2392_v9 = vld [vmem:[#allocation2 + $0x28] ss:$0 sm:$0xff] }
  0xb2   :  { %v268_v36 = vpop.permute.xlu1 %267  ;;  %v266_v38 = vpop.permute.xlu0 %265  ;;  %v367_v31 = vrot.slane %v290_v56, 4 }
  0xb3   :  { %v273_v44 = vsel %vm269_vm6, %v268_v36, %v262_v12  ;;  %v271_v45 = vsel %vm269_vm6, %v264_v11, %v266_v38  ;;  %v270_v50 = vsel %vm269_vm6, %v266_v38, %v268_v36  ;;  %v355_v11 = vrot.slane %v224_v52, 4 }
  0xb4   :  { %v293_v57 = vmul.f32 %v2324_v29, %v273_v44  ;;  %v291_v61 = vmul.f32 %v2327_v39, %v271_v45  ;;  %v292_v63 = vmul.f32 %v2340_v47, %v270_v50  ;;  %v357_v12 = vrot.slane %v226_v55, 4 }
  0xb5   :  { %v385_v45 = vsel %vm375_vm3, %v2115_v3, %v356_v6  ;;  %v384_v3 = vsel %vm375_vm3, %v2099_v1, %v355_v11  ;;  %v2394_v6 = vld [vmem:[#allocation2 + $0x30] ss:$0 sm:$0xff] }
  0xb6   :  { %v231_v59 = vpop.permute.xlu1 %230  ;;  %v229_v60 = vpop.permute.xlu0 %228  ;;  %v370_v35 = vrot.slane %v293_v57, 4  ;;  %v368_v42 = vrot.slane %v291_v61, 4  ;;  %v369_v30 = vrot.slane %v292_v63, 4  ;;  %v386_v57 = vsel %vm375_vm3, %v2094_v0, %v357_v12  ;;  %v2390_v63 = vld [vmem:[#allocation2 + $0x38] ss:$0 sm:$0xff] }
  0xb7   :  { %v239_v62 = vsel %vm236_vm7, %v229_v60, %v231_v59 }
  0xb8   :  { %v257_v7 = vmul.f32 %v2348_v51, %v239_v62 }
  0xba   :  { %v235_v36 = vpop.permute.xlu1 %234  ;;  %v233_v38 = vpop.permute.xlu0 %232  ;;  %v388_v49 = vsel %vm375_vm3, %v257_v7, %v367_v31  ;;  %v2396_v7 = vld [vmem:[#allocation2 + $0x20] ss:$0 sm:$0xff] }
  0xbb   :  { %v240_v17 = vsel %vm236_vm7, %v235_v36, %v229_v60  ;;  %v237_v18 = vsel %vm236_vm7, %v233_v38, %v235_v36  ;;  %v238_v21 = vsel %vm236_vm7, %v231_v59, %v233_v38  ;;  %v1778_v2 = vpack.c.bf16 %v388_v49, %v384_v3 }
  0xbc   :  { %v260_v10 = vmul.f32 %v2359_v16, %v240_v17  ;;  %v258_v43 = vmul.f32 %v2362_v5, %v238_v21  ;;  %v259_v44 = vmul.f32 %v2365_v8, %v237_v18  ;;  %v54_v18 = vld [vmem:[%s2796_s2] sm:$0xff]  ;;  %v2031_v21 = vmov 1.0|1.0  }
  0xbe   :  { %v297_v50 = vpop.permute.xlu1 %296  ;;  %v295_v52 = vpop.permute.xlu0 %294  ;;  %v389_v55 = vsel %vm375_vm3, %v258_v43, %v368_v42  ;;  %v391_v56 = vsel %vm375_vm3, %v260_v10, %v370_v35  ;;  %v390_v59 = vsel %vm375_vm3, %v259_v44, %v369_v30 }
  0xbf   :  { %v1776_v60 = vpack.c.bf16 %v389_v55, %v385_v45  ;;  %v1784_v61 = vpack.c.bf16 %v391_v56, %v387_v48  ;;  %v1786_v62 = vpack.c.bf16 %v390_v59, %v386_v57  ;;  %v305_v0 = vsel %vm302_vm8, %v295_v52, %v297_v50 }
  0xc0   :  { %v323_v17 = vmul.f32 %v2396_v7, %v305_v0 }
  0xc1   :  { %1777 = vmatprep.subr.bf16.mxu0 %v1776_v60  ;;  %1785 = vmatprep.subr.bf16.mxu1 %v1784_v61 }
  0xc2   :  { %v301_v12 = vpop.permute.xlu1 %300  ;;  %v299_v31 = vpop.permute.xlu0 %298  ;;  %1779 = vmatpush1.bf16.msra.mxu0 %v1778_v2  ;;  %1787 = vmatpush1.bf16.msra.mxu1 %v1786_v62 }
  0xc3   :  { %v306_v1 = vsel %vm302_vm8, %v301_v12, %v295_v52  ;;  %v303_v11 = vsel %vm302_vm8, %v299_v31, %v301_v12  ;;  %v304_v35 = vsel %vm302_vm8, %v297_v50, %v299_v31  ;;  %v2032_v52 = vmov 0  }
  0xc4   :  { %v326_v36 = vmul.f32 %v2390_v63, %v306_v1  ;;  %v324_v38 = vmul.f32 %v2392_v9, %v304_v35  ;;  %v325_v42 = vmul.f32 %v2394_v6, %v303_v11  ;;  %1963 = vset.pattern.permute.xlu0 %v2032_v52  ;;  %1964 = vset.pattern.permute.xlu1 %v2032_v52 }
  0xc6   :  { %1484 = vmatprep.subr.msk.mxu0 %vm375_vm3, %v324_v38  ;;  %1487 = vmatprep.subr.msk.mxu1 %vm375_vm3, %v326_v36 }
  0xc7   :  { %1485 = vmatpush1.msk.msra.mxu0 %vm375_vm3, %v323_v17  ;;  %1488 = vmatpush1.msk.msra.mxu1 %vm375_vm3, %v325_v42 }
  0xc8   :  { %1486 = vmatmul.mubr.msk.f32.vlgmr.msra.gmra.mrb[0].mxu0 %vm392_vm9, %v54_v18  ;;  %1489 = vmatmul.mubr.msk.f32.vlgmr.msra.gmra.mrb[0].mxu1 %vm392_vm9, %v54_v18  ;;  %v839_v18 = vld [vmem:[%s2797_s3] sm:$0xff] }
  0xc9   :  { %1788 = vmatprep.subr.bf16.mxu0 %v2031_v21  ;;  %1804 = vmatprep.subr.bf16.mxu1 %v2031_v21 }
  0xca   :  { %1789 = vmatpush3.bf16.msra.mxu0 %v2031_v21  ;;  %1805 = vmatpush3.bf16.msra.mxu1 %v2031_v21 }
  0xcb   :  { %1790 = vmatprep.subr.bf16.mxu0 %v2031_v21  ;;  %1806 = vmatprep.subr.bf16.mxu1 %v2031_v21 }
  0xce   :  { %1791 = vmatpush3.bf16.msra.mxu0 %v2031_v21  ;;  %1807 = vmatpush3.bf16.msra.mxu1 %v2031_v21 }
  0xcf   :  { %1792 = vmatprep.subr.bf16.mxu0 %v2031_v21  ;;  %1808 = vmatprep.subr.bf16.mxu1 %v2031_v21 }
  0xd2   :  { %1793 = vmatpush3.bf16.msra.mxu0 %v2031_v21  ;;  %1809 = vmatpush3.bf16.msra.mxu1 %v2031_v21 }
  0xd3   :  { %1794 = vmatprep.subr.bf16.mxu0 %v2031_v21  ;;  %1810 = vmatprep.subr.bf16.mxu1 %v2031_v21 }
  0xd6   :  { %1795 = vmatpush3.bf16.msra.mxu0 %v2031_v21  ;;  %1811 = vmatpush3.bf16.msra.mxu1 %v2031_v21 }
  0xd7   :  { %1796 = vmatprep.subr.bf16.mxu0 %v2031_v21  ;;  %1812 = vmatprep.subr.bf16.mxu1 %v2031_v21 }
  0xda   :  { %1797 = vmatpush3.bf16.msra.mxu0 %v2031_v21  ;;  %1813 = vmatpush3.bf16.msra.mxu1 %v2031_v21 }
  0xdb   :  { %1798 = vmatprep.subr.bf16.mxu0 %v2031_v21  ;;  %1814 = vmatprep.subr.bf16.mxu1 %v2031_v21 }
  0xde   :  { %1799 = vmatpush3.bf16.msra.mxu0 %v2031_v21  ;;  %1815 = vmatpush3.bf16.msra.mxu1 %v2031_v21 }
  0xdf   :  { %1800 = vmatprep.subr.bf16.mxu0 %v2031_v21  ;;  %1816 = vmatprep.subr.bf16.mxu1 %v2031_v21 }
  0xe2   :  { %1801 = vmatpush3.bf16.msra.mxu0 %v2031_v21  ;;  %1817 = vmatpush3.bf16.msra.mxu1 %v2031_v21 }
  0xe3   :  { %1802 = vmatprep.subr.bf16.mxu0 %v2031_v21  ;;  %1818 = vmatprep.subr.bf16.mxu1 %v2031_v21 }
  0xe6   :  { %1803 = vmatpush3.bf16.msra.mxu0 %v2031_v21  ;;  %1819 = vmatpush3.bf16.msra.mxu1 %v2031_v21 }
  0xe7   :  { %1820 = vmatprep.subr.bf16.mxu0 %v2031_v21  ;;  %1836 = vmatprep.subr.bf16.mxu1 %v2031_v21 }
 0x19b   :  { %v2451_v30 = vpop.f32.mrb[0].mxu0  ;;  %v2453_v10 = vpop.f32.mrb[0].mxu1 }
 0x19c   :  { %v2455_v43 = vpop.f32.mrb[1].mxu0  ;;  %v2457_v44 = vpop.f32.mrb[1].mxu1  ;;  %v690_v49 = vmul.f32 %v2451_v30, %v2451_v30  ;;  %v692_v50 = vmul.f32 %v2453_v10, %v2453_v10 }
 0x19d   :  { %v691_v45 = vmul.f32 %v2455_v43, %v2455_v43  ;;  %v693_v48 = vmul.f32 %v2457_v44, %v2457_v44  ;;  %614 = vmatprep.mubr.f32.mxu0 %v2455_v43  ;;  %684 = vmatprep.mubr.f32.mxu1 %v2457_v44 }
 0x19e   :  { %615 = vmatmul.mubr.f32.vlgmr.msra.gmra.mrb[2].mxu0 %v2451_v30  ;;  %685 = vmatmul.mubr.f32.vlgmr.msra.gmra.mrb[2].mxu1 %v2453_v10 }
 0x19f   :  { %1821 = vmatpush3.bf16.msra.mxu0 %v2031_v21  ;;  %1837 = vmatpush3.bf16.msra.mxu1 %v2031_v21 }
 0x1a0   :  { %758 = vmatprep.mubr.f32.mxu0 %v691_v45  ;;  %828 = vmatprep.mubr.f32.mxu1 %v693_v48 }
 0x1a1   :  { %1822 = vmatprep.subr.bf16.mxu0 %v2031_v21  ;;  %1838 = vmatprep.subr.bf16.mxu1 %v2031_v21 }
 0x1a3   :  { %1823 = vmatpush3.bf16.msra.mxu0 %v2031_v21  ;;  %1839 = vmatpush3.bf16.msra.mxu1 %v2031_v21 }
 0x1a4   :  { %1824 = vmatprep.subr.bf16.mxu0 %v2031_v21  ;;  %1840 = vmatprep.subr.bf16.mxu1 %v2031_v21 }
 0x1a7   :  { %1825 = vmatpush3.bf16.msra.mxu0 %v2031_v21  ;;  %1841 = vmatpush3.bf16.msra.mxu1 %v2031_v21 }
 0x1a8   :  { %1826 = vmatprep.subr.bf16.mxu0 %v2031_v21  ;;  %1842 = vmatprep.subr.bf16.mxu1 %v2031_v21 }
 0x1ab   :  { %1827 = vmatpush3.bf16.msra.mxu0 %v2031_v21  ;;  %1843 = vmatpush3.bf16.msra.mxu1 %v2031_v21 }
 0x1ac   :  { %1828 = vmatprep.subr.bf16.mxu0 %v2031_v21  ;;  %1844 = vmatprep.subr.bf16.mxu1 %v2031_v21 }
 0x1af   :  { %1829 = vmatpush3.bf16.msra.mxu0 %v2031_v21  ;;  %1845 = vmatpush3.bf16.msra.mxu1 %v2031_v21 }
 0x1b0   :  { %1830 = vmatprep.subr.bf16.mxu0 %v2031_v21  ;;  %1846 = vmatprep.subr.bf16.mxu1 %v2031_v21 }
 0x1b3   :  { %1831 = vmatpush3.bf16.msra.mxu0 %v2031_v21  ;;  %1847 = vmatpush3.bf16.msra.mxu1 %v2031_v21 }
 0x1b4   :  { %1832 = vmatprep.subr.bf16.mxu0 %v2031_v21  ;;  %1848 = vmatprep.subr.bf16.mxu1 %v2031_v21 }
 0x1b7   :  { %1833 = vmatpush3.bf16.msra.mxu0 %v2031_v21  ;;  %1849 = vmatpush3.bf16.msra.mxu1 %v2031_v21 }
 0x1b8   :  { %1834 = vmatprep.subr.bf16.mxu0 %v2031_v21  ;;  %1850 = vmatprep.subr.bf16.mxu1 %v2031_v21 }
 0x1bb   :  { %1835 = vmatpush3.bf16.msra.mxu0 %v2031_v21  ;;  %1851 = vmatpush3.bf16.msra.mxu1 %v2031_v21 }
 0x1be   :  { %759 = vmatmul.mubr.f32.vlgmr.msra.gmra.mrb[4].mxu0 %v690_v49  ;;  %829 = vmatmul.mubr.f32.vlgmr.msra.gmra.mrb[4].mxu1 %v692_v50  ;;  %v843_v49 = vld [vmem:[%s2798_s4] sm:$0xff] }
 0x1bf   :  { %1065 = vmatprep.mubr.f32.mxu0 %v2029_v4  ;;  %1136 = vmatprep.mubr.f32.mxu1 %v2029_v4 }
 0x271   :  { %v1524_v55 = vpop.f32.mrb[2].mxu0  ;;  %v1559_v56 = vpop.f32.mrb[2].mxu1 }
 0x272   :  { %v1525_v57 = vpop.f32.mrb[3].mxu0  ;;  %v1560_v59 = vpop.f32.mrb[3].mxu1 }
 0x273   :  { %v1526_v60 = vadd.f32 %v1525_v57, %v1524_v55  ;;  %v1561_v61 = vadd.f32 %v1560_v59, %v1559_v56 }
 0x275   :  { %v687_v3 = vadd.f32 %v1561_v61, %v1526_v60 }
 0x277   :  { %v834_v31 = vmul.f32 0.001953125, %v687_v3 }
 0x279   :  { %v836_v36 = vmul.f32 %v834_v31, %v834_v31 }
 0x291   :  { %v1594_v62 = vpop.f32.mrb[4].mxu0  ;;  %v1629_v2 = vpop.f32.mrb[4].mxu1 }
 0x292   :  { %v1595_v0 = vpop.f32.mrb[5].mxu0  ;;  %v1630_v12 = vpop.f32.mrb[5].mxu1 }
 0x293   :  { %v1596_v1 = vadd.f32 %v1595_v0, %v1594_v62  ;;  %v1631_v11 = vadd.f32 %v1630_v12, %v1629_v2 }
 0x295   :  { %v831_v35 = vadd.f32 %v1631_v11, %v1596_v1 }
 0x297   :  { %v835_v4 = vmul.f32 0.001953125, %v831_v35 }
 0x299   :  { %v837_v38 = vsub.f32 %v835_v4, %v836_v36 }
 0x29b   :  { %v838_v42 = vmax.f32 %v837_v38, 0.0 }
 0x29d   :  { %v840_v17 = vadd.f32 1e-05, %v838_v42 }
 0x29f   :  { %1967 = vrsqrt.f32 %v840_v17 }
 0x2a9   :  { %v1968_v45 = vpop.eup %1967 }
 0x2aa   :  { %v842_v48 = vmul.f32 %v1968_v45, %v839_v18 }
 0x2ac   :  { %848 = vperm.xlu0 %1963, %v842_v48   ;;  %v844_v50 = vmul.f32 %v842_v48, %v834_v31 }
 0x2ae   :  { %v845_v52 = vsub.f32 %v843_v49, %v844_v50 }
 0x2b0   :  { %857 = vperm.xlu1 %1964, %v845_v52  }
 0x32b   :  { %v849_v55 = vpop.permute.xlu0 %848 }
 0x32c   :  { %v851_v56 = vmul.f32 %v849_v55, %v2451_v30  ;;  %v852_v57 = vmul.f32 %v849_v55, %v2455_v43  ;;  %v853_v60 = vmul.f32 %v849_v55, %v2453_v10  ;;  %v854_v61 = vmul.f32 %v849_v55, %v2457_v44 }
 0x32f   :  { %v858_v59 = vpop.permute.xlu1 %857 }
 0x330   :  { %v860_v3 = vadd.f32 %v858_v59, %v851_v56  ;;  %v861_v62 = vadd.f32 %v858_v59, %v852_v57  ;;  %v862_v2 = vadd.f32 %v858_v59, %v853_v60  ;;  %v863_v0 = vadd.f32 %v858_v59, %v854_v61 }
 0x332   :  { %v2513_v12 = vmax.f32 %v860_v3, 0.0  ;;  %v2515_v1 = vmax.f32 %v861_v62, 0.0  ;;  %v2521_v30 = vmax.f32 %v862_v2, 0.0  ;;  %v2523_v43 = vmax.f32 %v863_v0, 0.0 }
 0x334   :  { %871 = vrot.lane.b32.xlu0 %v2515_v1, %s2024_s0  ;;  %869 = vrot.lane.b32.xlu1 %v2513_v12, %s2024_s0 }
 0x338   :  { %875 = vrot.lane.b32.xlu0 %v2523_v43, %s2024_s0  ;;  %873 = vrot.lane.b32.xlu1 %v2521_v30, %s2024_s0 }
 0x33c   :  { %887 = vrot.lane.b32.xlu0 %v2515_v1, %s2022_s23  ;;  %885 = vrot.lane.b32.xlu1 %v2513_v12, %s2022_s23 }
 0x340   :  { %891 = vrot.lane.b32.xlu0 %v2523_v43, %s2022_s23  ;;  %889 = vrot.lane.b32.xlu1 %v2521_v30, %s2022_s23 }
 0x344   :  { %903 = vrot.lane.b32.xlu0 %v2515_v1, %s2025_s24  ;;  %901 = vrot.lane.b32.xlu1 %v2513_v12, %s2025_s24 }
 0x348   :  { %907 = vrot.lane.b32.xlu0 %v2523_v43, %s2025_s24  ;;  %905 = vrot.lane.b32.xlu1 %v2521_v30, %s2025_s24 }
 0x34c   :  { %919 = vrot.lane.b32.xlu0 %v2515_v1, %s2023_s1  ;;  %917 = vrot.lane.b32.xlu1 %v2513_v12, %s2023_s1 }
 0x350   :  { %923 = vrot.lane.b32.xlu0 %v2523_v43, %s2023_s1  ;;  %921 = vrot.lane.b32.xlu1 %v2521_v30, %s2023_s1 }
 0x354   :  { %935 = vrot.lane.b32.xlu0 %v2515_v1, %s2026_s25  ;;  %933 = vrot.lane.b32.xlu1 %v2513_v12, %s2026_s25 }
 0x358   :  { %939 = vrot.lane.b32.xlu0 %v2523_v43, %s2026_s25  ;;  %937 = vrot.lane.b32.xlu1 %v2521_v30, %s2026_s25 }
 0x35c   :  { %951 = vrot.lane.b32.xlu0 %v2515_v1, %s2028_s27  ;;  %949 = vrot.lane.b32.xlu1 %v2513_v12, %s2028_s27 }
 0x360   :  { %955 = vrot.lane.b32.xlu0 %v2523_v43, %s2028_s27  ;;  %953 = vrot.lane.b32.xlu1 %v2521_v30, %s2028_s27 }
 0x364   :  { %967 = vrot.lane.b32.xlu0 %v2515_v1, %s2027_s26  ;;  %965 = vrot.lane.b32.xlu1 %v2513_v12, %s2027_s26 }
 0x368   :  { %971 = vrot.lane.b32.xlu0 %v2523_v43, %s2027_s26  ;;  %969 = vrot.lane.b32.xlu1 %v2521_v30, %s2027_s26 }
 0x36c   :  { %983 = vrot.lane.b32.xlu0 %v2515_v1, %s2030_s28  ;;  %981 = vrot.lane.b32.xlu1 %v2513_v12, %s2030_s28 }
 0x370   :  { %987 = vrot.lane.b32.xlu0 %v2523_v43, %s2030_s28  ;;  %985 = vrot.lane.b32.xlu1 %v2521_v30, %s2030_s28 }
 0x3a6   :  { %v872_v10 = vpop.permute.xlu0 %871  ;;  %v870_v44 = vpop.permute.xlu1 %869 }
 0x3a7   :  { %v879_v35 = vsel %vm71_vm2, %v870_v44, %v872_v10 }
 0x3a8   :  { %v882_v17 = vmul.f32 %v879_v35, %v2219_v34 }
 0x3aa   :  { %v876_v31 = vpop.permute.xlu0 %875  ;;  %v874_v11 = vpop.permute.xlu1 %873 }
 0x3ab   :  { %v880_v38 = vsel %vm71_vm2, %v876_v31, %v870_v44  ;;  %v878_v18 = vsel %vm71_vm2, %v872_v10, %v874_v11  ;;  %v877_v48 = vsel %vm71_vm2, %v874_v11, %v876_v31 }
 0x3ac   :  { %v881_v49 = vmul.f32 %v880_v38, %v2226_v37  ;;  %v883_v56 = vmul.f32 %v878_v18, %v2233_v40 }
 0x3ae   :  { %v888_v36 = vpop.permute.xlu0 %887  ;;  %v886_v4 = vpop.permute.xlu1 %885 }
 0x3af   :  { %v895_v42 = vsel %vm104_vm0, %v886_v4, %v888_v36 }
 0x3b0   :  { %v898_v45 = vmul.f32 %v895_v42, %v2202_v26  ;;  %v884_v26 = vmul.f32 %v877_v48, %v2236_v41 }
 0x3b2   :  { %v892_v50 = vpop.permute.xlu0 %891  ;;  %v890_v52 = vpop.permute.xlu1 %889  ;;  %v1852_v55 = vpack.c.bf16 %v898_v45, %v882_v17 }
 0x3b3   :  { %v896_v57 = vsel %vm104_vm0, %v892_v50, %v886_v4  ;;  %v893_v34 = vsel %vm104_vm0, %v890_v52, %v892_v50  ;;  %v894_v59 = vsel %vm104_vm0, %v888_v36, %v890_v52 }
 0x3b4   :  { %v897_v60 = vmul.f32 %v896_v57, %v2192_v23  ;;  %v899_v37 = vmul.f32 %v894_v59, %v2205_v27  ;;  %v900_v61 = vmul.f32 %v893_v34, %v2195_v24  ;;  %1853 = vmatprep.subr.bf16.mxu0 %v1852_v55 }
 0x3b6   :  { %v1854_v3 = vpack.c.bf16 %v897_v60, %v881_v49  ;;  %v1870_v40 = vpack.c.bf16 %v899_v37, %v883_v56  ;;  %v904_v62 = vpop.permute.xlu0 %903  ;;  %v902_v2 = vpop.permute.xlu1 %901  ;;  %v1868_v0 = vpack.c.bf16 %v900_v61, %v884_v26 }
 0x3b7   :  { %v911_v41 = vsel %vm137_vm4, %v902_v2, %v904_v62 }
 0x3b8   :  { %1855 = vmatpush1.bf16.msra.mxu0 %v1854_v3  ;;  %1869 = vmatprep.subr.bf16.mxu1 %v1868_v0  ;;  %v914_v11 = vmul.f32 %v911_v41, %v2244_v46 }
 0x3b9   :  { %1871 = vmatpush1.bf16.msra.mxu1 %v1870_v40 }
 0x3ba   :  { %v908_v10 = vpop.permute.xlu0 %907  ;;  %v906_v44 = vpop.permute.xlu1 %905 }
 0x3bb   :  { %v912_v27 = vsel %vm137_vm4, %v908_v10, %v902_v2  ;;  %v910_v35 = vsel %vm137_vm4, %v904_v62, %v906_v44  ;;  %v909_v4 = vsel %vm137_vm4, %v906_v44, %v908_v10 }
 0x3bc   :  { %v913_v38 = vmul.f32 %v912_v27, %v2255_v53  ;;  %v915_v45 = vmul.f32 %v910_v35, %v2258_v54 }
 0x3be   :  { %v920_v31 = vpop.permute.xlu0 %919  ;;  %v918_v23 = vpop.permute.xlu1 %917 }
 0x3bf   :  { %v927_v24 = vsel %vm170_vm1, %v918_v23, %v920_v31 }
 0x3c0   :  { %v930_v36 = vmul.f32 %v927_v24, %v2199_v25  ;;  %v916_v25 = vmul.f32 %v909_v4, %v2265_v58 }
 0x3c2   :  { %v924_v42 = vpop.permute.xlu0 %923  ;;  %v922_v17 = vpop.permute.xlu1 %921  ;;  %v1856_v18 = vpack.c.bf16 %v930_v36, %v914_v11 }
 0x3c3   :  { %v928_v48 = vsel %vm170_vm1, %v924_v42, %v918_v23  ;;  %v925_v46 = vsel %vm170_vm1, %v922_v17, %v924_v42  ;;  %v926_v49 = vsel %vm170_vm1, %v920_v31, %v922_v17 }
 0x3c4   :  { %v929_v50 = vmul.f32 %v928_v48, %v2208_v28  ;;  %v931_v53 = vmul.f32 %v926_v49, %v2212_v32  ;;  %v932_v52 = vmul.f32 %v925_v46, %v2215_v33  ;;  %1857 = vmatprep.subr.bf16.mxu0 %v1856_v18 }
 0x3c6   :  { %v1858_v55 = vpack.c.bf16 %v929_v50, %v913_v38  ;;  %v1874_v54 = vpack.c.bf16 %v931_v53, %v915_v45  ;;  %v936_v56 = vpop.permute.xlu0 %935  ;;  %v934_v57 = vpop.permute.xlu1 %933  ;;  %v1872_v34 = vpack.c.bf16 %v932_v52, %v916_v25 }
 0x3c7   :  { %v943_v59 = vsel %vm203_vm5, %v934_v57, %v936_v56 }
 0x3c8   :  { %1859 = vmatpush1.bf16.msra.mxu0 %v1858_v55  ;;  %1873 = vmatprep.subr.bf16.mxu1 %v1872_v34  ;;  %v945_v28 = vmul.f32 %v943_v59, %v2303_v14 }
 0x3c9   :  { %1875 = vmatpush1.bf16.msra.mxu1 %v1874_v54  ;;  %v868_v54 = vld [vmem:[%s2799_s5] sm:$0xff] }
 0x3ca   :  { %v940_v26 = vpop.permute.xlu0 %939  ;;  %v938_v58 = vpop.permute.xlu1 %937  ;;  %v1862_v10 = vpack.c.bf16 %v945_v28, %v2513_v12 }
 0x3cb   :  { %v944_v32 = vsel %vm203_vm5, %v940_v26, %v934_v57  ;;  %v941_v33 = vsel %vm203_vm5, %v938_v58, %v940_v26  ;;  %v942_v60 = vsel %vm203_vm5, %v936_v56, %v938_v58 }
 0x3cc   :  { %v948_v37 = vmul.f32 %v944_v32, %v2306_v15  ;;  %v946_v61 = vmul.f32 %v942_v60, %v2310_v19  ;;  %v947_v3 = vmul.f32 %v941_v33, %v2313_v20 }
 0x3ce   :  { %v1878_v40 = vpack.c.bf16 %v947_v3, %v2521_v30  ;;  %v952_v62 = vpop.permute.xlu0 %951  ;;  %v950_v2 = vpop.permute.xlu1 %949  ;;  %v1860_v14 = vpack.c.bf16 %v946_v61, %v2515_v1  ;;  %v1876_v0 = vpack.c.bf16 %v948_v37, %v2523_v43 }
 0x3cf   :  { %v959_v43 = vsel %vm236_vm7, %v950_v2, %v952_v62 }
 0x3d0   :  { %1861 = vmatprep.subr.bf16.mxu0 %v1860_v14  ;;  %1877 = vmatprep.subr.bf16.mxu1 %v1876_v0  ;;  %v961_v17 = vmul.f32 %v959_v43, %v2348_v51 }
 0x3d1   :  { %1863 = vmatpush1.bf16.msra.mxu0 %v1862_v10  ;;  %1879 = vmatpush1.bf16.msra.mxu1 %v1878_v40 }
 0x3d2   :  { %v956_v44 = vpop.permute.xlu0 %955  ;;  %v954_v15 = vpop.permute.xlu1 %953 }
 0x3d3   :  { %v960_v20 = vsel %vm236_vm7, %v956_v44, %v950_v2  ;;  %v958_v30 = vsel %vm236_vm7, %v952_v62, %v954_v15  ;;  %v957_v12 = vsel %vm236_vm7, %v954_v15, %v956_v44 }
 0x3d4   :  { %v964_v31 = vmul.f32 %v960_v20, %v2359_v16  ;;  %v962_v23 = vmul.f32 %v958_v30, %v2362_v5  ;;  %v963_v38 = vmul.f32 %v957_v12, %v2365_v8 }
 0x3d6   :  { %v968_v41 = vpop.permute.xlu0 %967  ;;  %v966_v19 = vpop.permute.xlu1 %965 }
 0x3d7   :  { %v975_v1 = vsel %vm269_vm6, %v966_v19, %v968_v41 }
 0x3d8   :  { %v977_v11 = vmul.f32 %v975_v1, %v2316_v22  ;;  %v1436_v1 = vld [vmem:[%s2801_s7] sm:$0xff] }
 0x3da   :  { %v972_v27 = vpop.permute.xlu0 %971  ;;  %v970_v24 = vpop.permute.xlu1 %969  ;;  %v1866_v49 = vpack.c.bf16 %v977_v11, %v961_v17 }
 0x3db   :  { %v976_v35 = vsel %vm269_vm6, %v972_v27, %v966_v19  ;;  %v973_v36 = vsel %vm269_vm6, %v970_v24, %v972_v27  ;;  %v974_v4 = vsel %vm269_vm6, %v968_v41, %v970_v24  ;;  %v1432_v19 = vld [vmem:[%s2800_s6] sm:$0xff]  ;;  %s2033_s6 = smov [#allocation5]  }
 0x3dc   :  { %v980_v42 = vmul.f32 %v976_v35, %v2324_v29  ;;  %v978_v16 = vmul.f32 %v974_v4, %v2327_v39  ;;  %v979_v5 = vmul.f32 %v973_v36, %v2340_v47  ;;  %s1471_s15 = sshll.u32 %s2033_s6, 4  ;;  %s1472_s15 = int_to_ptr.vmem [resolvable:$true] %s1471_s15 }
 0x3dd   :  { %s1993_s7 = scalar_lea.vmem %s1472_s15, 512  ;;  %p1998_p9 = scmp.lt.s32.totalorder %s1472_s15, %s1472_s15 }
 0x3de   :  { %v1882_v22 = vpack.c.bf16 %v979_v5, %v963_v38  ;;  %v984_v18 = vpop.permute.xlu0 %983  ;;  %v982_v45 = vpop.permute.xlu1 %981  ;;  %v1864_v48 = vpack.c.bf16 %v978_v16, %v962_v23  ;;  %v1880_v46 = vpack.c.bf16 %v980_v42, %v964_v31  ;;  %p1994_p8 = scmp.ne.s32.totalorder %s1472_s15, %s1993_s7  ;;  %p1999_p10 = scmp.lt.s32.totalorder %s1993_s7, %s1993_s7 }
 0x3df   :  { %v991_v8 = vsel %vm302_vm8, %v982_v45, %v984_v18 }
 0x3e0   :  { %1865 = vmatprep.subr.bf16.mxu0 %v1864_v48  ;;  %1881 = vmatprep.subr.bf16.mxu1 %v1880_v46  ;;  %v993_v55 = vmul.f32 %v2396_v7, %v991_v8  ;;  %p2000_p11 = por %p1999_p10, %p1998_p9 }
 0x3e1   :  { %1867 = vmatpush1.bf16.msra.mxu0 %v1866_v49  ;;  %1883 = vmatpush1.bf16.msra.mxu1 %v1882_v22 }
 0x3e2   :  { %v988_v29 = vpop.permute.xlu0 %987  ;;  %v986_v25 = vpop.permute.xlu1 %985  ;;  %p2001_p12 = pnand %p2000_p11, %p1994_p8 }
 0x3e3   :  { %v992_v39 = vsel %vm302_vm8, %v988_v29, %v982_v45  ;;  %v989_v47 = vsel %vm302_vm8, %v986_v25, %v988_v29  ;;  %v990_v51 = vsel %vm302_vm8, %v984_v18, %v986_v25 }
 0x3e4   :  { %v996_v50 = vmul.f32 %v2390_v63, %v992_v39  ;;  %v994_v53 = vmul.f32 %v2392_v9, %v990_v51  ;;  %v995_v52 = vmul.f32 %v2394_v6, %v989_v47 }
 0x3e6   :  { %1017 = vmatprep.subr.mxu0 %v994_v53  ;;  %1088 = vmatprep.subr.mxu1 %v996_v50 }
 0x3e7   :  { %1018 = vmatpush1.msra.mxu0 %v993_v55  ;;  %1089 = vmatpush1.msra.mxu1 %v995_v52 }
 0x3e8   :  { %1490 = vmatmul.mubr.msk.f32.vlgmr.msra.gmra.mrb[6].mxu0 %vm997_vm10, %v868_v54  ;;  %1491 = vmatmul.mubr.msk.f32.vlgmr.msra.gmra.mrb[6].mxu1 %vm997_vm10, %v868_v54 }
 0x3e9   :  { %1884 = vmatprep.subr.bf16.mxu0 %v2031_v21  ;;  %1900 = vmatprep.subr.bf16.mxu1 %v2031_v21 }
 0x3ea   :  { %1885 = vmatpush3.bf16.msra.mxu0 %v2031_v21  ;;  %1901 = vmatpush3.bf16.msra.mxu1 %v2031_v21 }
 0x3eb   :  { %1886 = vmatprep.subr.bf16.mxu0 %v2031_v21  ;;  %1902 = vmatprep.subr.bf16.mxu1 %v2031_v21 }
 0x3ee   :  { %1887 = vmatpush3.bf16.msra.mxu0 %v2031_v21  ;;  %1903 = vmatpush3.bf16.msra.mxu1 %v2031_v21 }
 0x3ef   :  { %1888 = vmatprep.subr.bf16.mxu0 %v2031_v21  ;;  %1904 = vmatprep.subr.bf16.mxu1 %v2031_v21 }
 0x3f2   :  { %1889 = vmatpush3.bf16.msra.mxu0 %v2031_v21  ;;  %1905 = vmatpush3.bf16.msra.mxu1 %v2031_v21 }
 0x3f3   :  { %1890 = vmatprep.subr.bf16.mxu0 %v2031_v21  ;;  %1906 = vmatprep.subr.bf16.mxu1 %v2031_v21 }
 0x3f6   :  { %1891 = vmatpush3.bf16.msra.mxu0 %v2031_v21  ;;  %1907 = vmatpush3.bf16.msra.mxu1 %v2031_v21 }
 0x3f7   :  { %1892 = vmatprep.subr.bf16.mxu0 %v2031_v21  ;;  %1908 = vmatprep.subr.bf16.mxu1 %v2031_v21 }
 0x3fa   :  { %1893 = vmatpush3.bf16.msra.mxu0 %v2031_v21  ;;  %1909 = vmatpush3.bf16.msra.mxu1 %v2031_v21 }
 0x3fb   :  { %1894 = vmatprep.subr.bf16.mxu0 %v2031_v21  ;;  %1910 = vmatprep.subr.bf16.mxu1 %v2031_v21 }
 0x3fe   :  { %1895 = vmatpush3.bf16.msra.mxu0 %v2031_v21  ;;  %1911 = vmatpush3.bf16.msra.mxu1 %v2031_v21 }
 0x3ff   :  { %1896 = vmatprep.subr.bf16.mxu0 %v2031_v21  ;;  %1912 = vmatprep.subr.bf16.mxu1 %v2031_v21 }
 0x402   :  { %1897 = vmatpush3.bf16.msra.mxu0 %v2031_v21  ;;  %1913 = vmatpush3.bf16.msra.mxu1 %v2031_v21 }
 0x403   :  { %1898 = vmatprep.subr.bf16.mxu0 %v2031_v21  ;;  %1914 = vmatprep.subr.bf16.mxu1 %v2031_v21 }
 0x406   :  { %1899 = vmatpush3.bf16.msra.mxu0 %v2031_v21  ;;  %1915 = vmatpush3.bf16.msra.mxu1 %v2031_v21 }
 0x407   :  { %1916 = vmatprep.subr.bf16.mxu0 %v2031_v21  ;;  %1932 = vmatprep.subr.bf16.mxu1 %v2031_v21 }
 0x4bb   :  { %v2722_v13 = vpop.f32.mrb[6].mxu0  ;;  %v2724_v63 = vpop.f32.mrb[6].mxu1 }
 0x4bc   :  { %v2726_v9 = vpop.f32.mrb[7].mxu0  ;;  %v2728_v6 = vpop.f32.mrb[7].mxu1  ;;  %v1283_v57 = vmul.f32 %v2722_v13, %v2722_v13  ;;  %v1285_v34 = vmul.f32 %v2724_v63, %v2724_v63 }
 0x4bd   :  { %v1284_v7 = vmul.f32 %v2726_v9, %v2726_v9  ;;  %v1286_v56 = vmul.f32 %v2728_v6, %v2728_v6  ;;  %1207 = vmatprep.mubr.f32.mxu0 %v2726_v9  ;;  %1277 = vmatprep.mubr.f32.mxu1 %v2728_v6 }
 0x4be   :  { %1208 = vmatmul.mubr.f32.vlgmr.msra.gmra.mrb[8].mxu0 %v2722_v13  ;;  %1278 = vmatmul.mubr.f32.vlgmr.msra.gmra.mrb[8].mxu1 %v2724_v63 }
 0x4bf   :  { %1917 = vmatpush3.bf16.msra.mxu0 %v2031_v21  ;;  %1933 = vmatpush3.bf16.msra.mxu1 %v2031_v21 }
 0x4c0   :  { %1351 = vmatprep.mubr.f32.mxu0 %v1284_v7  ;;  %1421 = vmatprep.mubr.f32.mxu1 %v1286_v56 }
 0x4c1   :  { %1918 = vmatprep.subr.bf16.mxu0 %v2031_v21  ;;  %1934 = vmatprep.subr.bf16.mxu1 %v2031_v21 }
 0x4c3   :  { %1919 = vmatpush3.bf16.msra.mxu0 %v2031_v21  ;;  %1935 = vmatpush3.bf16.msra.mxu1 %v2031_v21 }
 0x4c4   :  { %1920 = vmatprep.subr.bf16.mxu0 %v2031_v21  ;;  %1936 = vmatprep.subr.bf16.mxu1 %v2031_v21 }
 0x4c7   :  { %1921 = vmatpush3.bf16.msra.mxu0 %v2031_v21  ;;  %1937 = vmatpush3.bf16.msra.mxu1 %v2031_v21 }
 0x4c8   :  { %1922 = vmatprep.subr.bf16.mxu0 %v2031_v21  ;;  %1938 = vmatprep.subr.bf16.mxu1 %v2031_v21 }
 0x4cb   :  { %1923 = vmatpush3.bf16.msra.mxu0 %v2031_v21  ;;  %1939 = vmatpush3.bf16.msra.mxu1 %v2031_v21 }
 0x4cc   :  { %1924 = vmatprep.subr.bf16.mxu0 %v2031_v21  ;;  %1940 = vmatprep.subr.bf16.mxu1 %v2031_v21 }
 0x4cf   :  { %1925 = vmatpush3.bf16.msra.mxu0 %v2031_v21  ;;  %1941 = vmatpush3.bf16.msra.mxu1 %v2031_v21 }
 0x4d0   :  { %1926 = vmatprep.subr.bf16.mxu0 %v2031_v21  ;;  %1942 = vmatprep.subr.bf16.mxu1 %v2031_v21 }
 0x4d3   :  { %1927 = vmatpush3.bf16.msra.mxu0 %v2031_v21  ;;  %1943 = vmatpush3.bf16.msra.mxu1 %v2031_v21 }
 0x4d4   :  { %1928 = vmatprep.subr.bf16.mxu0 %v2031_v21  ;;  %1944 = vmatprep.subr.bf16.mxu1 %v2031_v21 }
 0x4d7   :  { %1929 = vmatpush3.bf16.msra.mxu0 %v2031_v21  ;;  %1945 = vmatpush3.bf16.msra.mxu1 %v2031_v21 }
 0x4d8   :  { %1930 = vmatprep.subr.bf16.mxu0 %v2031_v21  ;;  %1946 = vmatprep.subr.bf16.mxu1 %v2031_v21 }
 0x4db   :  { %1931 = vmatpush3.bf16.msra.mxu0 %v2031_v21  ;;  %1947 = vmatpush3.bf16.msra.mxu1 %v2031_v21 }
 0x4de   :  { %1352 = vmatmul.mubr.f32.vlgmr.msra.gmra.mrb[10].mxu0 %v1283_v57  ;;  %1422 = vmatmul.mubr.f32.vlgmr.msra.gmra.mrb[10].mxu1 %v1285_v34 }
 0x591   :  { %v1664_v59 = vpop.f32.mrb[8].mxu0  ;;  %v1699_v26 = vpop.f32.mrb[8].mxu1 }
 0x592   :  { %v1665_v58 = vpop.f32.mrb[9].mxu0  ;;  %v1700_v28 = vpop.f32.mrb[9].mxu1 }
 0x593   :  { %v1666_v32 = vadd.f32 %v1665_v58, %v1664_v59  ;;  %v1701_v33 = vadd.f32 %v1700_v28, %v1699_v26 }
 0x595   :  { %v1280_v60 = vadd.f32 %v1701_v33, %v1666_v32 }
 0x597   :  { %v1427_v21 = vmul.f32 0.001953125, %v1280_v60 }
 0x599   :  { %v1429_v0 = vmul.f32 %v1427_v21, %v1427_v21 }
 0x5b1   :  { %v1734_v37 = vpop.f32.mrb[10].mxu0  ;;  %v1769_v61 = vpop.f32.mrb[10].mxu1 }
 0x5b2   :  { %v1735_v3 = vpop.f32.mrb[11].mxu0  ;;  %v1770_v40 = vpop.f32.mrb[11].mxu1 }
 0x5b3   :  { %v1736_v62 = vadd.f32 %v1735_v3, %v1734_v37  ;;  %v1771_v2 = vadd.f32 %v1770_v40, %v1769_v61 }
 0x5b5   :  { %v1424_v14 = vadd.f32 %v1771_v2, %v1736_v62 }
 0x5b7   :  { %v1428_v10 = vmul.f32 0.001953125, %v1424_v14 }
 0x5b9   :  { %v1430_v44 = vsub.f32 %v1428_v10, %v1429_v0 }
 0x5bb   :  { %v1431_v15 = vmax.f32 %v1430_v44, 0.0 }
 0x5bd   :  { %v1433_v41 = vadd.f32 1e-05, %v1431_v15 }
 0x5bf   :  { %1969 = vrsqrt.f32 %v1433_v41 }
 0x5c9   :  { %v1970_v20 = vpop.eup %1969 }
 0x5ca   :  { %v1435_v30 = vmul.f32 %v1970_v20, %v1432_v19 }
 0x5cc   :  { %1441 = vperm.xlu1 %1964, %v1435_v30   ;;  %v1437_v12 = vmul.f32 %v1435_v30, %v1427_v21 }
 0x5ce   :  { %v1438_v43 = vsub.f32 %v1436_v1, %v1437_v12 }
 0x5d0   :  { %1450 = vperm.xlu0 %1963, %v1438_v43  }
 0x64b   :  { %v1442_v31 = vpop.permute.xlu1 %1441 }
 0x64c   :  { %v1444_v23 = vmul.f32 %v1442_v31, %v2722_v13  ;;  %v1445_v27 = vmul.f32 %v1442_v31, %v2726_v9  ;;  %v1446_v24 = vmul.f32 %v1442_v31, %v2724_v63  ;;  %v1447_v11 = vmul.f32 %v1442_v31, %v2728_v6 }
 0x64f   :  { %v1451_v35 = vpop.permute.xlu0 %1450 }
 0x650   :  { %v1453_v36 = vadd.f32 %v1451_v35, %v1444_v23  ;;  %v1454_v4 = vadd.f32 %v1451_v35, %v1445_v27  ;;  %v1455_v38 = vadd.f32 %v1451_v35, %v1446_v24  ;;  %v1456_v42 = vadd.f32 %v1451_v35, %v1447_v11 }
 0x652   :  { %v1457_v16 = vmax.f32 %v1453_v36, 0.0  ;;  %v1458_v5 = vmax.f32 %v1454_v4, 0.0  ;;  %v1459_v17 = vmax.f32 %v1455_v38, 0.0  ;;  %v1460_v22 = vmax.f32 %v1456_v42, 0.0 }
 0x654   :  { %1461 = vst [vmem:[#allocation5] sm:$0xff] %v1457_v16  ;;  %1462 = vst [vmem:[#allocation5 + $0x8] sm:$0xff] %v1458_v5 }
 0x655   :  { %1463 = vst [vmem:[#allocation5 + $0x10] sm:$0xff] %v1459_v17  ;;  %1464 = vst [vmem:[#allocation5 + $0x18] sm:$0xff] %v1460_v22 }
 0x656   :  { %2004 = shalt.err (!%p2001_p12)
}
 0x657   :  { %s2005_s18 = scalar_lea.hbm %s2802_s8, 512 }
 0x658   :  { %p2006_p13 = scmp.ne.s32.totalorder %s2802_s8, %s2005_s18  ;;  %p2009_p0 = scmp.lt.u32.totalorder %s2005_s18, %s2802_s8 }
 0x65a   :  { %p2011_p1 = pnand %p2009_p0, %p2006_p13 }
 0x65c   :  { %2014 = shalt.err (!%p2011_p1)
}
 0x65d   :  { %1474 = dma.vmem_to_hbm [thread:$0]  %s1472_s15, 512, %s2802_s8, [#allocation4]  }
 0x65e   :  { %2017 = dma.done.wait [#allocation4], 512  }
 0x65f   :  { %2018 = vsyncadd [#allocation4], 4294966784 }
 0x660   :  { %1478 = vsyncpa [#allocation3], 1 }
 0x661   :  { %1479 = vsyncpa [#allocation4], 1 }

</bundles_post_ra>
